<compile_context>
chip_gen: v7x
topology: tpu7x:2x2x1
jax: 0.10.0
libtpu: 0.0.40
codegen_flags: <defaults>
</compile_context>

<pallas_src>
import functools

import jax
import jax.numpy as jnp
from jax import lax
from jax.experimental import pallas as pl
from jax.experimental.pallas import tpu as pltpu

LANE = 128        # lane width: feature dims zero-padded to this
NUM_LAYERS = 3
TM_MAX = 512      # A_hat row-tile upper bound (output-node rows per grid step)
TK_MAX = 2048     # A_hat column (reduction) tile upper bound


def _round_up(v, m):
    return (v + m - 1) // m * m


def _pick_tile(n_pad, max_tile):
    """Largest multiple of 128 that divides n_pad and is <= max_tile."""
    best = LANE
    t = LANE
    while t <= min(max_tile, n_pad):
        if n_pad % t == 0:
            best = t
        t += LANE
    return best


def _vmem_limit_bytes():
    cap = 64 * 1024 * 1024            # safe default (v7x physical per-TC VMEM)
    try:
        info = pltpu.get_tpu_info()
        cap = int(getattr(info, "vmem_capacity_bytes", cap))
    except Exception:
        pass
    # ~12.5% compiler headroom; never above ~100 MiB (v5e/v6e sweet spot).
    return int(min(100 * 1024 * 1024, cap - cap // 8))


# ----------------------------- Pallas kernel ------------------------------ #
def fused_gcn_kernel(a_ref, xw0_ref, wnext_ref, b_ref, o_ref,
                     acc_ref, xw_ref, *, num_layers, n_pad):
    """Fused 3-layer GCN:  H_l = relu?(A_hat @ XW_l + b_l),  XW_{l+1} = H_l W_{l+1}.

    grid = (layer l, output row-tile i, reduction tile k)  -- all sequential.

      a_ref    : [TM, TK]            bf16  A_hat tile (i, k)
      xw0_ref  : [N_pad, F_pad]      bf16  XW_0 = X @ W1 (resident, read once)
      wnext_ref: [1, F_pad, F_pad]   bf16  W_{l+1} (blocked by layer)
      b_ref    : [1, 1, F_pad]       f32   layer-l bias
      o_ref    : [TM, F_pad]         f32   output row-tile i (written last layer)
    scratch (persist across grid steps):
      acc_ref  : [TM, F_pad]         f32   k-reduction accumulator
      xw_ref   : [2*N_pad, F_pad]    bf16  XW ping-pong: slot l%2 = current layer
    """
    l = pl.program_id(0)
    i = pl.program_id(1)
    k = pl.program_id(2)
    nk = pl.num_programs(2)
    tm = a_ref.shape[0]
    tk = a_ref.shape[1]

    # Very first grid step: seed ping-pong slot 0 with XW_0 = X @ W1.
    @pl.when((l == 0) & (i == 0) & (k == 0))
    def _():
        xw_ref[pl.ds(0, n_pad), :] = xw0_ref[...]

    # k-reduction: acc += A[i, k] @ XW_l[k]  (bf16 x bf16 -> f32 on the MXU).
    @pl.when(k == 0)
    def _():
        acc_ref[...] = jnp.zeros_like(acc_ref)

    cur_base = (l % 2) * n_pad
    k_start = pl.multiple_of(cur_base + k * tk, tk)
    acc_ref[...] += jnp.dot(a_ref[...], xw_ref[pl.ds(k_start, tk), :],
                            preferred_element_type=jnp.float32)

    # Epilogue at the last k tile: bias in f32, then either push the rows
    # through W_{l+1} into the other ping-pong slot (non-final layers) or
    # store the lane-dense f32 output tile (final layer only).
    @pl.when(k == nk - 1)
    def _():
        h = acc_ref[...] + b_ref[0]                       # f32 epilogue

        @pl.when(l < num_layers - 1)
        def _():
            h_act = jnp.maximum(h, 0.0)                   # ReLU
            # Dropout (eval mode) == identity between layers.
            xw_next = jnp.dot(h_act.astype(jnp.bfloat16), wnext_ref[0],
                              preferred_element_type=jnp.float32)
            nxt_base = ((l + 1) % 2) * n_pad
            i_start = pl.multiple_of(nxt_base + i * tm, tm)
            xw_ref[pl.ds(i_start, tm), :] = xw_next.astype(xw_ref.dtype)

        @pl.when(l == num_layers - 1)
        def _():
            # Note: the out block index map ignores l, so earlier layers may
            # still flush (stale) buffers when ni > 1; the sequential grid
            # guarantees this final write wins in HBM.
            o_ref[...] = h.astype(o_ref.dtype)


# ------------------------------ JAX glue ---------------------------------- #
def build_normalized_adjacency(edge_index, num_nodes):
    """Dense A_hat = D^{-1/2} (A + remaining self loops) D^{-1/2}."""
    src = edge_index[0]
    dst = edge_index[1]
    a = jnp.zeros((num_nodes, num_nodes), jnp.float32)
    # scatter-ADD so duplicate edges accumulate; message flows src -> dst.
    a = a.at[dst, src].add(1.0)
    # add_remaining_self_loops: only add a self loop where one is missing.
    diag = jnp.diagonal(a)
    a = a + jnp.diag(jnp.where(diag == 0.0, 1.0, 0.0))
    deg = jnp.sum(a, axis=1)
    d_inv_sqrt = jnp.where(deg > 0.0, lax.rsqrt(deg), 0.0)
    return d_inv_sqrt[:, None] * a * d_inv_sqrt[None, :]


def glorot(key, shape):
    fan_in, fan_out = shape
    limit = jnp.sqrt(6.0 / (fan_in + fan_out))
    return jax.random.uniform(key, shape, jnp.float32, -limit, limit)


def init_params(key, input_dim, hidden_dim, output_dim):
    k1, k2, k3 = jax.random.split(key, 3)
    return {
        "w1": glorot(k1, (input_dim, hidden_dim)),
        "b1": jnp.zeros((hidden_dim,), jnp.float32),
        "w2": glorot(k2, (hidden_dim, hidden_dim)),
        "b2": jnp.zeros((hidden_dim,), jnp.float32),
        "w3": glorot(k3, (hidden_dim, output_dim)),
        "b3": jnp.zeros((output_dim,), jnp.float32),
    }


def gcn_model_forward(params, x, edge_index):
    n, f_in = x.shape
    hidden = params["w1"].shape[1]
    f_out = params["w3"].shape[1]

    f_pad = _round_up(max(f_in, hidden, f_out), LANE)
    n_pad = _round_up(n, LANE)                  # minimal lane/sublane padding
    tm = _pick_tile(n_pad, TM_MAX)
    tk = _pick_tile(n_pad, TK_MAX)              # usually collapses k entirely
    ni, nk = n_pad // tm, n_pad // tk

    # Dense normalized adjacency (JAX glue), padded + bf16 for the MXU.
    a_hat = build_normalized_adjacency(edge_index, n)
    a_pad = jnp.zeros((n_pad, n_pad), jnp.bfloat16).at[:n, :n].set(
        a_hat.astype(jnp.bfloat16))

    x_pad = jnp.zeros((n_pad, f_pad), jnp.float32).at[:n, :f_in].set(x)

    def pad_w(w):
        fi, fo = w.shape
        return jnp.zeros((f_pad, f_pad), jnp.float32).at[:fi, :fo].set(w)

    def pad_b(b):
        return jnp.zeros((f_pad,), jnp.float32).at[:b.shape[0]].set(b)

    # Layer-0 XW is a tiny [N, F] x [F, F] matmul: do it in XLA, feed bf16.
    xw0 = (x_pad @ pad_w(params["w1"])).astype(jnp.bfloat16)

    # W_{l+1}, blocked by layer index l (layer-l epilogue consumes it); last
    # entry is a never-read duplicate so the index map stays trivially (l,0,0).
    w_next = jnp.stack([pad_w(params["w2"]), pad_w(params["w3"]),
                        pad_w(params["w3"])]).astype(jnp.bfloat16)
    b_stack = jnp.stack([pad_b(params["b1"]), pad_b(params["b2"]),
                         pad_b(params["b3"])])[:, None, :]      # [3,1,F_pad]

    # Generation-aware VMEM budget + trace-time footprint check.
    vmem_limit = _vmem_limit_bytes()
    vmem_needed = (2 * tm * tk * 2            # A tile (bf16, double-buffered)
                   + 2 * n_pad * f_pad * 2    # resident XW_0 input
                   + 2 * f_pad * f_pad * 2    # W_{l+1} block
                   + 2 * f_pad * 4            # bias block
                   + 2 * tm * f_pad * 4       # output block
                   + tm * f_pad * 4           # accumulator scratch
                   + 2 * n_pad * f_pad * 2)   # XW ping-pong scratch
    if vmem_needed > vmem_limit:
        raise ValueError(
            f"GCN kernel VMEM footprint {vmem_needed} B exceeds budget "
            f"{vmem_limit} B; reduce TM_MAX/TK_MAX or the graph size.")

    kernel = functools.partial(fused_gcn_kernel, num_layers=NUM_LAYERS,
                               n_pad=n_pad)

    out_pad = pl.pallas_call(
        kernel,
        out_shape=jax.ShapeDtypeStruct((n_pad, f_pad), jnp.float32),
        grid_spec=pltpu.PrefetchScalarGridSpec(
            num_scalar_prefetch=0,
            grid=(NUM_LAYERS, ni, nk),
            in_specs=[
                pl.BlockSpec((tm, tk), lambda l, i, k: (i, k)),            # A_hat
                pl.BlockSpec((n_pad, f_pad), lambda l, i, k: (0, 0)),      # XW_0
                pl.BlockSpec((1, f_pad, f_pad), lambda l, i, k: (l, 0, 0)),  # W_{l+1}
                pl.BlockSpec((1, 1, f_pad), lambda l, i, k: (l, 0, 0)),      # b_l
            ],
            out_specs=pl.BlockSpec((tm, f_pad), lambda l, i, k: (i, 0)),
            scratch_shapes=[
                pltpu.VMEM((tm, f_pad), jnp.float32),           # accumulator
                pltpu.VMEM((2 * n_pad, f_pad), jnp.bfloat16),   # XW ping-pong
            ],
        ),
        # All axes "arbitrary": layer/row/reduction carry state through the
        # resident XW ping-pong scratch (see v7x megacore TODO at the top).
        compiler_params=pltpu.CompilerParams(
            dimension_semantics=("arbitrary", "arbitrary", "arbitrary"),
            vmem_limit_bytes=vmem_limit,
        ),
    )(a_pad, xw0, w_next, b_stack)

    return out_pad[:n, :f_out]


def gcn_reference(params, x, edge_index):
    """Pure-JAX f32 reference (eval-mode dropout == identity)."""
    a_hat = build_normalized_adjacency(edge_index, x.shape[0])
    h = a_hat @ (x @ params["w1"]) + params["b1"]
    h = jnp.maximum(h, 0.0)
    h = a_hat @ (h @ params["w2"]) + params["b2"]
    h = jnp.maximum(h, 0.0)
    return a_hat @ (h @ params["w3"]) + params["b3"]


# ------------------------------- main -------------------------------------- #
if __name__ == "__main__":
    key = jax.random.PRNGKey(0)
    k_x, k_e, k_p = jax.random.split(key, 3)

    # Small synthetic graph consistent with the module's forward
    # (hidden_dim = output_dim = 64 per the spec; graphs.pt not read).
    num_nodes = 16
    input_dim = 8
    hidden_dim = 64
    output_dim = 64
    num_edges = 40

    x = jax.random.normal(k_x, (num_nodes, input_dim), jnp.float32)
    edge_index = jax.random.randint(k_e, (2, num_edges), 0, num_nodes,
                                    dtype=jnp.int32)
    params = init_params(k_p, input_dim, hidden_dim, output_dim)

    fwd = jax.jit(gcn_model_forward)
    out = fwd(params, x, edge_index)
    jax.block_until_ready(out)

    assert out.shape == (num_nodes, output_dim)
    assert out.dtype == jnp.float32

    # Loose tolerance: kernel uses bf16 A_hat / weights with f32 accumulation.
    ref = gcn_reference(params, x, edge_index)
    assert jnp.allclose(out, ref, rtol=5e-2, atol=5e-2), (
        float(jnp.max(jnp.abs(out - ref))))

    print("KERNEL_OK")
</pallas_src>

<mosaic_0001>
module attributes {stable_mosaic.version = 11 : i64} {
  func.func @fused_gcn_kernel(%arg0: i32, %arg1: i32, %arg2: i32, %arg3: memref<128x128xbf16, #tpu.memory_space<vmem>>, %arg4: memref<128x128xbf16, #tpu.memory_space<vmem>>, %arg5: memref<1x128x128xbf16, #tpu.memory_space<vmem>>, %arg6: memref<1x1x128xf32, #tpu.memory_space<vmem>>, %arg7: memref<128x128xf32, #tpu.memory_space<vmem>>, %arg8: memref<128x128xf32, #tpu.memory_space<vmem>>, %arg9: memref<256x128xbf16, #tpu.memory_space<vmem>>) attributes {dimension_semantics = [#tpu.dimension_semantics<arbitrary>, #tpu.dimension_semantics<arbitrary>, #tpu.dimension_semantics<arbitrary>], iteration_bounds = array<i64: 3, 1, 1>, scalar_prefetch = 0 : i64, scratch_operands = 2 : i64, tpu.core_type = #tpu.core_type<tc>, window_params = [{transform_indices = @transform_0, window_bounds = array<i64: 128, 128>}, {pipeline_mode = #tpu.pipeline_mode<synchronous>, transform_indices = @transform_1, window_bounds = array<i64: 128, 128>}, {transform_indices = @transform_2, window_bounds = array<i64: 1, 128, 128>}, {transform_indices = @transform_3, window_bounds = array<i64: 1, 1, 128>}, {transform_indices = @transform_4, window_bounds = array<i64: 128, 128>}]} {
    %c0_i32 = arith.constant 0 : i32
    %0 = arith.cmpi eq, %arg0, %c0_i32 : i32
    %c0_i32_0 = arith.constant 0 : i32
    %1 = arith.cmpi eq, %arg1, %c0_i32_0 : i32
    %2 = arith.andi %0, %1 : i1
    %c0_i32_1 = arith.constant 0 : i32
    %3 = arith.cmpi eq, %arg2, %c0_i32_1 : i32
    %4 = arith.andi %2, %3 : i1
    %5 = arith.extui %4 : i1 to i32
    %c0_i32_2 = arith.constant 0 : i32
    %6 = arith.cmpi ne, %5, %c0_i32_2 : i32
    scf.if %6 {
      %c0_18 = arith.constant 0 : index
      %c0_19 = arith.constant 0 : index
      %34 = vector.load %arg4[%c0_18, %c0_19] : memref<128x128xbf16, #tpu.memory_space<vmem>>, vector<128x128xbf16>
      %c0_20 = arith.constant 0 : index
      %c0_21 = arith.constant 0 : index
      %35 = vector.load %arg9[%c0_20, %c0_21] : memref<256x128xbf16, #tpu.memory_space<vmem>>, vector<128x128xbf16>
      tpu.vector_store %arg9[%c0_20, %c0_21], %34 {strides = array<i32>} : memref<256x128xbf16, #tpu.memory_space<vmem>>, vector<128x128xbf16>,
    } else {
    }
    %c0_i32_3 = arith.constant 0 : i32
    %7 = arith.cmpi eq, %arg2, %c0_i32_3 : i32
    %8 = arith.extui %7 : i1 to i32
    %c0_i32_4 = arith.constant 0 : i32
    %9 = arith.cmpi ne, %8, %c0_i32_4 : i32
    scf.if %9 {
      %cst_18 = arith.constant 0.000000e+00 : f32
      %34 = vector.broadcast %cst_18 : f32 to vector<128x128xf32>
      %c0_19 = arith.constant 0 : index
      %c0_20 = arith.constant 0 : index
      %35 = vector.load %arg8[%c0_19, %c0_20] : memref<128x128xf32, #tpu.memory_space<vmem>>, vector<128x128xf32>
      tpu.vector_store %arg8[%c0_19, %c0_20], %34 {strides = array<i32>} : memref<128x128xf32, #tpu.memory_space<vmem>>, vector<128x128xf32>,
    } else {
    }
    %c2_i32 = arith.constant 2 : i32
    %c0_i32_5 = arith.constant 0 : i32
    %10 = arith.cmpi eq, %c2_i32, %c0_i32_5 : i32
    %c1_i32 = arith.constant 1 : i32
    %11 = arith.select %10, %c1_i32, %c2_i32 : i32
    %12 = arith.remsi %arg0, %11 : i32
    %c0_i32_6 = arith.constant 0 : i32
    %13 = arith.cmpi ne, %12, %c0_i32_6 : i32
    %c0_i32_7 = arith.constant 0 : i32
    %14 = arith.cmpi slt, %12, %c0_i32_7 : i32
    %c0_i32_8 = arith.constant 0 : i32
    %15 = arith.cmpi slt, %11, %c0_i32_8 : i32
    %16 = arith.xori %14, %15 : i1
    %17 = arith.andi %16, %13 : i1
    %18 = arith.addi %12, %11 : i32
    %19 = arith.select %17, %18, %12 : i32
    %c128_i32 = arith.constant 128 : i32
    %20 = arith.muli %19, %c128_i32 : i32
    %c128_i32_9 = arith.constant 128 : i32
    %21 = arith.muli %arg2, %c128_i32_9 : i32
    %22 = arith.addi %20, %21 : i32
    %23 = tpu.assume_multiple %22, 128 : i32
    %c0 = arith.constant 0 : index
    %c0_10 = arith.constant 0 : index
    %24 = vector.load %arg8[%c0, %c0_10] : memref<128x128xf32, #tpu.memory_space<vmem>>, vector<128x128xf32>
    %c0_11 = arith.constant 0 : index
    %c0_12 = arith.constant 0 : index
    %25 = vector.load %arg3[%c0_11, %c0_12] : memref<128x128xbf16, #tpu.memory_space<vmem>>, vector<128x128xbf16>
    %26 = arith.index_cast %23 : i32 to index
    %c0_13 = arith.constant 0 : index
    %27 = vector.load %arg9[%26, %c0_13] : memref<256x128xbf16, #tpu.memory_space<vmem>>, vector<128x128xbf16>
    %cst = arith.constant dense<0.000000e+00> : vector<128x128xf32>
    %28 = tpu.matmul %25, %27, %cst {dimension_numbers = #tpu.dot_dimension_numbers<[1], [0], [0], [1], [0, 0, 1, 1], [], []>} : vector<128x128xbf16>, vector<128x128xbf16>, vector<128x128xf32> -> vector<128x128xf32>
    %29 = arith.addf %24, %28 : vector<128x128xf32>
    %c0_14 = arith.constant 0 : index
    %c0_15 = arith.constant 0 : index
    %30 = vector.load %arg8[%c0_14, %c0_15] : memref<128x128xf32, #tpu.memory_space<vmem>>, vector<128x128xf32>
    tpu.vector_store %arg8[%c0_14, %c0_15], %29 {strides = array<i32>} : memref<128x128xf32, #tpu.memory_space<vmem>>, vector<128x128xf32>,
    %c0_i32_16 = arith.constant 0 : i32
    %31 = arith.cmpi eq, %arg2, %c0_i32_16 : i32
    %32 = arith.extui %31 : i1 to i32
    %c0_i32_17 = arith.constant 0 : i32
    %33 = arith.cmpi ne, %32, %c0_i32_17 : i32
    scf.if %33 {
      %c0_18 = arith.constant 0 : index
      %c0_19 = arith.constant 0 : index
      %34 = vector.load %arg8[%c0_18, %c0_19] : memref<128x128xf32, #tpu.memory_space<vmem>>, vector<128x128xf32>
      %c0_20 = arith.constant 0 : index
      %c0_21 = arith.constant 0 : index
      %c0_22 = arith.constant 0 : index
      %35 = vector.load %arg6[%c0_20, %c0_21, %c0_22] : memref<1x1x128xf32, #tpu.memory_space<vmem>>, vector<1x1x128xf32>
      %36 = vector.shape_cast %35 : vector<1x1x128xf32> to vector<1x128xf32>
      %37 = vector.broadcast %36 : vector<1x128xf32> to vector<128x128xf32>
      %38 = arith.addf %34, %37 : vector<128x128xf32>
      %c2_i32_23 = arith.constant 2 : i32
      %39 = arith.cmpi slt, %arg0, %c2_i32_23 : i32
      %40 = arith.extui %39 : i1 to i32
      %c0_i32_24 = arith.constant 0 : i32
      %41 = arith.cmpi ne, %40, %c0_i32_24 : i32
      scf.if %41 {
        %cst_27 = arith.constant 0.000000e+00 : f32
        %45 = vector.broadcast %cst_27 : f32 to vector<128x128xf32>
        %46 = arith.maximumf %38, %45 : vector<128x128xf32>
        %47 = arith.truncf %46 : vector<128x128xf32> to vector<128x128xbf16>
        %c0_28 = arith.constant 0 : index
        %c0_29 = arith.constant 0 : index
        %c0_30 = arith.constant 0 : index
        %48 = vector.load %arg5[%c0_28, %c0_29, %c0_30] : memref<1x128x128xbf16, #tpu.memory_space<vmem>>, vector<1x128x128xbf16>
        %49 = vector.shape_cast %48 : vector<1x128x128xbf16> to vector<128x128xbf16>
        %cst_31 = arith.constant dense<0.000000e+00> : vector<128x128xf32>
        %50 = tpu.matmul %47, %49, %cst_31 {dimension_numbers = #tpu.dot_dimension_numbers<[1], [0], [0], [1], [0, 0, 1, 1], [], []>} : vector<128x128xbf16>, vector<128x128xbf16>, vector<128x128xf32> -> vector<128x128xf32>
        %c1_i32_32 = arith.constant 1 : i32
        %51 = arith.addi %arg0, %c1_i32_32 : i32
        %c2_i32_33 = arith.constant 2 : i32
        %c0_i32_34 = arith.constant 0 : i32
        %52 = arith.cmpi eq, %c2_i32_33, %c0_i32_34 : i32
        %c1_i32_35 = arith.constant 1 : i32
        %53 = arith.select %52, %c1_i32_35, %c2_i32_33 : i32
        %54 = arith.remsi %51, %53 : i32
        %c0_i32_36 = arith.constant 0 : i32
        %55 = arith.cmpi ne, %54, %c0_i32_36 : i32
        %c0_i32_37 = arith.constant 0 : i32
        %56 = arith.cmpi slt, %54, %c0_i32_37 : i32
        %c0_i32_38 = arith.constant 0 : i32
        %57 = arith.cmpi slt, %53, %c0_i32_38 : i32
        %58 = arith.xori %56, %57 : i1
        %59 = arith.andi %58, %55 : i1
        %60 = arith.addi %54, %53 : i32
        %61 = arith.select %59, %60, %54 : i32
        %c128_i32_39 = arith.constant 128 : i32
        %62 = arith.muli %61, %c128_i32_39 : i32
        %c128_i32_40 = arith.constant 128 : i32
        %63 = arith.muli %arg1, %c128_i32_40 : i32
        %64 = arith.addi %62, %63 : i32
        %65 = tpu.assume_multiple %64, 128 : i32
        %66 = arith.truncf %50 : vector<128x128xf32> to vector<128x128xbf16>
        %67 = arith.index_cast %65 : i32 to index
        %c0_41 = arith.constant 0 : index
        %68 = vector.load %arg9[%67, %c0_41] : memref<256x128xbf16, #tpu.memory_space<vmem>>, vector<128x128xbf16>
        tpu.vector_store %arg9[%67, %c0_41], %66 {strides = array<i32>} : memref<256x128xbf16, #tpu.memory_space<vmem>>, vector<128x128xbf16>,
      } else {
      }
      %c2_i32_25 = arith.constant 2 : i32
      %42 = arith.cmpi eq, %arg0, %c2_i32_25 : i32
      %43 = arith.extui %42 : i1 to i32
      %c0_i32_26 = arith.constant 0 : i32
      %44 = arith.cmpi ne, %43, %c0_i32_26 : i32
      scf.if %44 {
        %c0_27 = arith.constant 0 : index
        %c0_28 = arith.constant 0 : index
        %45 = vector.load %arg7[%c0_27, %c0_28] : memref<128x128xf32, #tpu.memory_space<vmem>>, vector<128x128xf32>
        tpu.vector_store %arg7[%c0_27, %c0_28], %38 {strides = array<i32>} : memref<128x128xf32, #tpu.memory_space<vmem>>, vector<128x128xf32>,
      } else {
      }
    } else {
    }
    return
  }
  func.func @transform_0(%arg0: i32, %arg1: i32, %arg2: i32) -> (i32, i32) {
    %c0_i32 = arith.constant 0 : i32
    return %arg1, %arg2 : i32, i32
  }
  func.func @transform_1(%arg0: i32, %arg1: i32, %arg2: i32) -> (i32, i32) {
    %c0_i32 = arith.constant 0 : i32
    %c0_i32_0 = arith.constant 0 : i32
    %c0_i32_1 = arith.constant 0 : i32
    return %c0_i32, %c0_i32_0 : i32, i32
  }
  func.func @transform_2(%arg0: i32, %arg1: i32, %arg2: i32) -> (i32, i32, i32) {
    %c0_i32 = arith.constant 0 : i32
    %c0_i32_0 = arith.constant 0 : i32
    %c0_i32_1 = arith.constant 0 : i32
    return %arg0, %c0_i32, %c0_i32_0 : i32, i32, i32
  }
  func.func @transform_3(%arg0: i32, %arg1: i32, %arg2: i32) -> (i32, i32, i32) {
    %c0_i32 = arith.constant 0 : i32
    %c0_i32_0 = arith.constant 0 : i32
    %c0_i32_1 = arith.constant 0 : i32
    return %arg0, %c0_i32, %c0_i32_0 : i32, i32, i32
  }
  func.func @transform_4(%arg0: i32, %arg1: i32, %arg2: i32) -> (i32, i32) {
    %c0_i32 = arith.constant 0 : i32
    %c0_i32_0 = arith.constant 0 : i32
    return %arg1, %c0_i32 : i32, i32
  }
}

</mosaic_0001>

<bundles_post_ra>
// kernel: gcn_model_forward.1
= control target key start
LH: loop header
LB: loop body
LE: loop exit
PB: predicated region body
PF: predicated region fallthrough
CT: control target
= control target key end

     0   :  { %s1263_s15 = smov 0   ;;  %s1265_s16 = smov 0   ;;  %s1496_s0 = inlined_call_operand.vmem [shape: bf16[128,128], index: 0, kind: input, shape index: {}]   ;;  %s1497_s1 = inlined_call_operand.vmem [shape: bf16[128,128], index: 1, kind: input, shape index: {}]   ;;  %s1498_s2 = inlined_call_operand.vmem [shape: bf16[3,128,128], index: 2, kind: input, shape index: {}]   ;;  %s1499_s3 = inlined_call_operand.vmem [shape: f32[3,1,128], index: 3, kind: input, shape index: {}]   ;;  %s1500_s4 = inlined_call_operand.vmem [shape: f32[128,128], index: 4, kind: output, shape index: {}]  }
   0x1   :  { %s1267_s17 = smov 0  }
   0x2 LB: > { %s33_s18 = sadd.s32 1, %s1232_s16  ;;  %p989_p0 = scmp.ge.s32.totalorder %s1236_s17, 1  ;;  %s1236_s17 = sphi %s1267_s17, %s14_s17   ;;  %s1232_s16 = sphi %s1265_s16, %s1502_s16   ;;  %s1228_s15 = sphi %s1263_s15, %s1501_s15  }
   0x3   : > { %p35_p1 = scmp.ge.s32.totalorder %s33_s18, 3  ;;  %p205_p2 = scmp.lt.s32.totalorder %s1236_s17, 4 }
   0x5   : > { %s1504_s18 = smov (%p35_p1, %s33_s18), 0  ;;  %p206_p3 = pnand %p989_p0, %p205_p2 }
   0x6   : > { %p251_p4 = scmp.lt.s32.totalorder (!%p206_p3), %s1228_s15, 2  ;;  %p266_p5 = scmp.eq.s32.totalorder (!%p206_p3), %s1228_s15, 0 }
   0x7   : > { %209 = sbr.rel (%p206_p3) target bundleno = 524 (0x20c), region = 36 }
   0xe   : > { %s1286_s19 = scalar_select %p251_p4, %s1228_s15, 2 }
   0xf   : > { %274 = sbr.rel (!%p266_p5) target bundleno = 22 (0x16), region = 40  ;;  %v1190_v0 = vld [vmem:[%s1497_s1] sm:$0xff] (%p266_p5)   ;;  %v1191_v1 = vld [vmem:[%s1497_s1 + $0x8] sm:$0xff] (%p266_p5)   ;;  %v1192_v2 = vld [vmem:[%s1497_s1 + $0x10] sm:$0xff] (%p266_p5)  }
  0x10   : > { %s1035_s20 = sshll.u32 %s1286_s19, 6  ;;  %s258_s23 = scalar_lea.vmem %s1499_s3, %s1286_s19  ;;  %339 = vst [vmem:[#allocation3] sm:$0xff] (%p266_p5), %v1190_v0  ;;  %340 = vst [vmem:[#allocation3 + $0x8] sm:$0xff] (%p266_p5), %v1191_v1  ;;  %v1193_v3 = vld [vmem:[%s1497_s1 + $0x18] sm:$0xff] (%p266_p5)   ;;  %v1194_v4 = vld [vmem:[%s1497_s1 + $0x20] sm:$0xff] (%p266_p5)  }
  0x11   : > { %s1296_s26 = scalar_lea.vmem %s1498_s2, %s1035_s20  ;;  %341 = vst [vmem:[#allocation3 + $0x10] sm:$0xff] (%p266_p5), %v1192_v2  ;;  %342 = vst [vmem:[#allocation3 + $0x18] sm:$0xff] (%p266_p5), %v1193_v3  ;;  %v1195_v5 = vld [vmem:[%s1497_s1 + $0x28] sm:$0xff] (%p266_p5)   ;;  %v1196_v6 = vld [vmem:[%s1497_s1 + $0x30] sm:$0xff] (%p266_p5)  }
  0x12   : > { %343 = vst [vmem:[#allocation3 + $0x20] sm:$0xff] (%p266_p5), %v1194_v4  ;;  %344 = vst [vmem:[#allocation3 + $0x28] sm:$0xff] (%p266_p5), %v1195_v5  ;;  %v1197_v7 = vld [vmem:[%s1497_s1 + $0x38] sm:$0xff] (%p266_p5)  }
  0x13   : > { %345 = vst [vmem:[#allocation3 + $0x30] sm:$0xff] (%p266_p5), %v1196_v6  ;;  %346 = vst [vmem:[#allocation3 + $0x38] sm:$0xff] (%p266_p5), %v1197_v7 }
  0x16 PF: > { %p366_p6 = scmp.lt.s32.totalorder %s1228_s15, 0  ;;  %s367_s22 = ssub.s32 0, %s1228_s15  ;;  %v1198_v8 = vld [vmem:[%s1496_s0] sm:$0xff]   ;;  %v1200_v18 = vld [vmem:[%s1496_s0 + $0x8] sm:$0xff]   ;;  %v1202_v20 = vld [vmem:[%s1496_s0 + $0x10] sm:$0xff]  }
  0x17   : > { %s1002_s24 = smin.u32 %s1228_s15, %s367_s22  ;;  %v1199_v9 = vld [vmem:[%s1496_s0 + $0x20] sm:$0xff]   ;;  %1086 = vmatprep.mubr.bf16.mxu0 %v1198_v8  ;;  %v1201_v19 = vld [vmem:[%s1496_s0 + $0x28] sm:$0xff]   ;;  %v1203_v21 = vld [vmem:[%s1496_s0 + $0x30] sm:$0xff]   ;;  %p1016_p8 = scmp.ge.s32.totalorder %s1228_s15, 2 }
  0x18   : > { %s369_s28 = sand.u32 1, %s1002_s24   ;;  %1094 = vmatprep.mubr.bf16.mxu1 %v1199_v9  ;;  %v1204_v22 = vld [vmem:[%s1496_s0 + $0x18] sm:$0xff]   ;;  %v1015_v24 = vld [vmem:[%s258_s23] ss:$0 sm:$0xff]  ;;  %v1207_v59 = vld [vmem:[%s1296_s26 + $0x8] sm:$0xff] (!%p1016_p8)   ;;  %s833_s19 = sadd.s32 (!%p1016_p8), 1, %s1228_s15 }
  0x19   : > { %s370_s5 = ssub.s32 0, %s369_s28  ;;  %v1205_v23 = vld [vmem:[%s1496_s0 + $0x38] sm:$0xff]   ;;  %v1206_v57 = vld [vmem:[%s1296_s26] sm:$0xff] (!%p1016_p8)   ;;  %v1208_v0 = vld [vmem:[%s1296_s26 + $0x10] sm:$0xff] (!%p1016_p8)   ;;  %s835_s23 = ssub.s32 (!%p1016_p8), 0, %s833_s19 }
  0x1a   : > { %s1506_s5 = smov (!%p366_p6, %s370_s5), %s369_s28  ;;  %v1209_v2 = vld [vmem:[%s1296_s26 + $0x18] sm:$0xff] (!%p1016_p8)   ;;  %v1210_v3 = vld [vmem:[%s1296_s26 + $0x20] sm:$0xff] (!%p1016_p8)   ;;  %v1211_v4 = vld [vmem:[%s1296_s26 + $0x28] sm:$0xff] (!%p1016_p8)   ;;  %p834_p9 = scmp.lt.s32.totalorder (!%p1016_p8), %s833_s19, 0 }
  0x1b   : > { %p1004_p7 = scmp.lt.s32.totalorder %s1506_s5, 0  ;;  %s376_s6 = sadd.s32 2, %s1506_s5  ;;  %v1212_v5 = vld [vmem:[%s1296_s26 + $0x30] sm:$0xff] (!%p1016_p8)   ;;  %v1213_v6 = vld [vmem:[%s1296_s26 + $0x38] sm:$0xff] (!%p1016_p8)  }
  0x1c   : > { %s1025_s26 = smin.u32 (!%p1016_p8), %s835_s23, %s833_s19 }
  0x1d   : > { %s1508_s6 = smov (!%p1004_p7, %s376_s6), %s1506_s5 }
  0x1e   : > { %s1005_s7 = sshll.u32 %s1508_s6, 7  ;;  %s837_s6 = sand.u32 (!%p1016_p8), 1, %s1025_s26  }
  0x1f   : > { %s413_s8 = sshra.s32 %s1005_s7, 4  ;;  %s838_s7 = ssub.s32 (!%p1016_p8), 0, %s837_s6 }
  0x20   : > { %s1006_s9 = sshll.u32 %s413_s8, 3 }
  0x21   : > { %s1331_s10 = scalar_lea.vmem [#allocation3], %s1006_s9 }
  0x22   : > { %v417_v10 = vld [vmem:[%s1331_s10] sm:$0xff]  ;;  %v418_v11 = vld [vmem:[%s1331_s10 + $0x8] sm:$0xff]  ;;  %v419_v12 = vld [vmem:[%s1331_s10 + $0x10] sm:$0xff] }
  0x23   : > { %1070 = vmatprep.subr.bf16.mxu0 %v417_v10  ;;  %1134 = vmatprep.subr.bf16.mxu1 %v417_v10  ;;  %v420_v13 = vld [vmem:[%s1331_s10 + $0x18] sm:$0xff]  ;;  %v421_v14 = vld [vmem:[%s1331_s10 + $0x20] sm:$0xff]  ;;  %v422_v15 = vld [vmem:[%s1331_s10 + $0x28] sm:$0xff] }
  0x24   : > { %1071 = vmatpush3.bf16.msra.mxu0 %v417_v10  ;;  %1142 = vmatpush3.bf16.msra.mxu1 %v417_v10  ;;  %v423_v16 = vld [vmem:[%s1331_s10 + $0x30] sm:$0xff]  ;;  %v424_v17 = vld [vmem:[%s1331_s10 + $0x38] sm:$0xff] }
  0x25   : > { %1072 = vmatprep.subr.bf16.mxu0 %v418_v11  ;;  %1135 = vmatprep.subr.bf16.mxu1 %v418_v11 }
  0x28   : > { %1073 = vmatpush3.bf16.msra.mxu0 %v418_v11  ;;  %1143 = vmatpush3.bf16.msra.mxu1 %v418_v11 }
  0x29   : > { %1074 = vmatprep.subr.bf16.mxu0 %v419_v12  ;;  %1136 = vmatprep.subr.bf16.mxu1 %v419_v12 }
  0x2c   : > { %1075 = vmatpush3.bf16.msra.mxu0 %v419_v12  ;;  %1144 = vmatpush3.bf16.msra.mxu1 %v419_v12 }
  0x2d   : > { %1076 = vmatprep.subr.bf16.mxu0 %v420_v13  ;;  %1137 = vmatprep.subr.bf16.mxu1 %v420_v13 }
  0x30   : > { %1077 = vmatpush3.bf16.msra.mxu0 %v420_v13  ;;  %1145 = vmatpush3.bf16.msra.mxu1 %v420_v13 }
  0x31   : > { %1078 = vmatprep.subr.bf16.mxu0 %v421_v14  ;;  %1138 = vmatprep.subr.bf16.mxu1 %v421_v14 }
  0x34   : > { %1079 = vmatpush3.bf16.msra.mxu0 %v421_v14  ;;  %1146 = vmatpush3.bf16.msra.mxu1 %v421_v14 }
  0x35   : > { %1080 = vmatprep.subr.bf16.mxu0 %v422_v15  ;;  %1139 = vmatprep.subr.bf16.mxu1 %v422_v15 }
  0x38   : > { %1081 = vmatpush3.bf16.msra.mxu0 %v422_v15  ;;  %1147 = vmatpush3.bf16.msra.mxu1 %v422_v15 }
  0x39   : > { %1082 = vmatprep.subr.bf16.mxu0 %v423_v16  ;;  %1140 = vmatprep.subr.bf16.mxu1 %v423_v16 }
  0x3c   : > { %1083 = vmatpush3.bf16.msra.mxu0 %v423_v16  ;;  %1148 = vmatpush3.bf16.msra.mxu1 %v423_v16 }
  0x3d   : > { %1084 = vmatprep.subr.bf16.mxu0 %v424_v17  ;;  %1141 = vmatprep.subr.bf16.mxu1 %v424_v17 }
  0x40   : > { %1085 = vmatpush3.bf16.msra.mxu0 %v424_v17  ;;  %1149 = vmatpush3.bf16.msra.mxu1 %v424_v17 }
  0x41   : > { %1102 = vmatprep.subr.bf16.mxu0 (!%p1016_p8), %v1206_v57  ;;  %1150 = vmatprep.subr.bf16.mxu1 (!%p1016_p8), %v1206_v57 }
  0x43   : > { %1087 = vmatmul.mubr.bf16.vlgmr.msra.gmra.mrb[0].mxu0 %v1200_v18  ;;  %1095 = vmatmul.mubr.bf16.vlgmr.msra.gmra.mrb[0].mxu1 %v1201_v19 }
  0x44   : > { %1090 = vmatprep.mubr.bf16.mxu0 %v1202_v20  ;;  %1098 = vmatprep.mubr.bf16.mxu1 %v1203_v21 }
  0x45   : > { %1103 = vmatpush3.bf16.msra.mxu0 (!%p1016_p8), %v1206_v57  ;;  %1158 = vmatpush3.bf16.msra.mxu1 (!%p1016_p8), %v1206_v57 }
  0x46   : > { %1104 = vmatprep.subr.bf16.mxu0 (!%p1016_p8), %v1207_v59  ;;  %1151 = vmatprep.subr.bf16.mxu1 (!%p1016_p8), %v1207_v59 }
  0x49   : > { %1105 = vmatpush3.bf16.msra.mxu0 (!%p1016_p8), %v1207_v59  ;;  %1159 = vmatpush3.bf16.msra.mxu1 (!%p1016_p8), %v1207_v59 }
  0x4a   : > { %1106 = vmatprep.subr.bf16.mxu0 (!%p1016_p8), %v1208_v0  ;;  %1152 = vmatprep.subr.bf16.mxu1 (!%p1016_p8), %v1208_v0 }
  0x4b   : > { %1091 = vmatmul.mubr.bf16.gmra.mrb[4].mxu0 %v1204_v22  ;;  %1099 = vmatmul.mubr.bf16.gmra.mrb[4].mxu1 %v1205_v23 }
  0x4d   : > { %1107 = vmatpush3.bf16.msra.mxu0 (!%p1016_p8), %v1208_v0  ;;  %1160 = vmatpush3.bf16.msra.mxu1 (!%p1016_p8), %v1208_v0 }
  0x4e   : > { %1108 = vmatprep.subr.bf16.mxu0 (!%p1016_p8), %v1209_v2  ;;  %1153 = vmatprep.subr.bf16.mxu1 (!%p1016_p8), %v1209_v2 }
  0x51   : > { %1109 = vmatpush3.bf16.msra.mxu0 (!%p1016_p8), %v1209_v2  ;;  %1161 = vmatpush3.bf16.msra.mxu1 (!%p1016_p8), %v1209_v2 }
  0x52   : > { %1110 = vmatprep.subr.bf16.mxu0 (!%p1016_p8), %v1210_v3  ;;  %1154 = vmatprep.subr.bf16.mxu1 (!%p1016_p8), %v1210_v3 }
  0x55   : > { %1111 = vmatpush3.bf16.msra.mxu0 (!%p1016_p8), %v1210_v3  ;;  %1162 = vmatpush3.bf16.msra.mxu1 (!%p1016_p8), %v1210_v3 }
  0x56   : > { %1112 = vmatprep.subr.bf16.mxu0 (!%p1016_p8), %v1211_v4  ;;  %1155 = vmatprep.subr.bf16.mxu1 (!%p1016_p8), %v1211_v4 }
  0x59   : > { %1113 = vmatpush3.bf16.msra.mxu0 (!%p1016_p8), %v1211_v4  ;;  %1163 = vmatpush3.bf16.msra.mxu1 (!%p1016_p8), %v1211_v4 }
  0x5a   : > { %1114 = vmatprep.subr.bf16.mxu0 (!%p1016_p8), %v1212_v5  ;;  %1156 = vmatprep.subr.bf16.mxu1 (!%p1016_p8), %v1212_v5 }
  0x5d   : > { %1115 = vmatpush3.bf16.msra.mxu0 (!%p1016_p8), %v1212_v5  ;;  %1164 = vmatpush3.bf16.msra.mxu1 (!%p1016_p8), %v1212_v5 }
  0x5e   : > { %1116 = vmatprep.subr.bf16.mxu0 (!%p1016_p8), %v1213_v6  ;;  %1157 = vmatprep.subr.bf16.mxu1 (!%p1016_p8), %v1213_v6 }
  0x61   : > { %1117 = vmatpush3.bf16.msra.mxu0 (!%p1016_p8), %v1213_v6  ;;  %1165 = vmatpush3.bf16.msra.mxu1 (!%p1016_p8), %v1213_v6 }
 0x116   : > { %v1088_v25 = vpop.f32.mrb[0].mxu0  ;;  %v1096_v26 = vpop.f32.mrb[0].mxu1 }
 0x117   : > { %v1364_v27 = vadd.f32 %v1088_v25, %v1015_v24  ;;  %v1366_v28 = vadd.f32 %v1096_v26, %v1015_v24  ;;  %v507_v29 = vpop.f32.mrb[1].mxu0  ;;  %v539_v30 = vpop.f32.mrb[1].mxu1 }
 0x118   : > { %v1368_v31 = vadd.f32 %v1015_v24, %v507_v29  ;;  %v1370_v32 = vadd.f32 %v1015_v24, %v539_v30  ;;  %v1089_v33 = vpop.f32.mrb[2].mxu0  ;;  %v1097_v34 = vpop.f32.mrb[2].mxu1 }
 0x119   : > { %v1372_v35 = vadd.f32 %v1089_v33, %v1015_v24  ;;  %v1374_v36 = vadd.f32 %v1097_v34, %v1015_v24  ;;  %v510_v37 = vpop.f32.mrb[3].mxu0  ;;  %v542_v38 = vpop.f32.mrb[3].mxu1  ;;  %v650_v7 = vmax.f32 (!%p1016_p8), %v1364_v27, 0.0  ;;  %v658_v9 = vmax.f32 (!%p1016_p8), %v1366_v28, 0.0 }
 0x11a   : > { %v1376_v39 = vadd.f32 %v1015_v24, %v510_v37  ;;  %v1378_v40 = vadd.f32 %v1015_v24, %v542_v38  ;;  %v648_v58 = vmax.f32 (!%p1016_p8), %v1368_v31, 0.0  ;;  %v656_v61 = vmax.f32 (!%p1016_p8), %v1370_v32, 0.0 }
 0x11b   : > { %v651_v8 = vmax.f32 (!%p1016_p8), %v1372_v35, 0.0  ;;  %v659_v10 = vmax.f32 (!%p1016_p8), %v1374_v36, 0.0 }
 0x11c   : > { %647 = sbr.rel (%p1016_p8) target bundleno = 515 (0x203), region = 52  ;;  %v649_v60 = vmax.f32 (!%p1016_p8), %v1376_v39, 0.0  ;;  %v657_v63 = vmax.f32 (!%p1016_p8), %v1378_v40, 0.0 }
 0x11d   : > { %v665_v15 = vpack.c.bf16 (!%p1016_p8), %v651_v8, %v650_v7  ;;  %v669_v16 = vpack.c.bf16 (!%p1016_p8), %v659_v10, %v658_v9 }
 0x11e   : > { %v1092_v41 = vpop.f32.mrb[4].mxu0  ;;  %v1100_v42 = vpop.f32.mrb[4].mxu1  ;;  %v664_v62 = vpack.c.bf16 (!%p1016_p8), %v649_v60, %v648_v58  ;;  %v668_v1 = vpack.c.bf16 (!%p1016_p8), %v657_v63, %v656_v61 }
 0x11f   : > { %v1380_v43 = vadd.f32 %v1092_v41, %v1015_v24  ;;  %v1382_v44 = vadd.f32 %v1100_v42, %v1015_v24  ;;  %v523_v45 = vpop.f32.mrb[5].mxu0  ;;  %v555_v46 = vpop.f32.mrb[5].mxu1 }
 0x120   : > { %v1384_v47 = vadd.f32 %v1015_v24, %v523_v45  ;;  %v1386_v48 = vadd.f32 %v1015_v24, %v555_v46  ;;  %v1093_v49 = vpop.f32.mrb[6].mxu0  ;;  %v1101_v50 = vpop.f32.mrb[6].mxu1  ;;  %1118 = vmatprep.mubr.bf16.mxu0 (!%p1016_p8), %v664_v62  ;;  %1126 = vmatprep.mubr.bf16.mxu1 (!%p1016_p8), %v668_v1 }
 0x121   : > { %v1388_v51 = vadd.f32 %v1093_v49, %v1015_v24  ;;  %v1390_v52 = vadd.f32 %v1101_v50, %v1015_v24  ;;  %v526_v53 = vpop.f32.mrb[7].mxu0  ;;  %v558_v54 = vpop.f32.mrb[7].mxu1  ;;  %1119 = vmatmul.mubr.bf16.vlgmr.msra.gmra.mrb[0].mxu0 (!%p1016_p8), %v665_v15  ;;  %1127 = vmatmul.mubr.bf16.vlgmr.msra.gmra.mrb[0].mxu1 (!%p1016_p8), %v669_v16  ;;  %v654_v19 = vmax.f32 (!%p1016_p8), %v1380_v43, 0.0  ;;  %v662_v21 = vmax.f32 (!%p1016_p8), %v1382_v44, 0.0 }
 0x122   : > { %v1392_v55 = vadd.f32 %v1015_v24, %v526_v53  ;;  %v1394_v56 = vadd.f32 %v1015_v24, %v558_v54  ;;  %v652_v11 = vmax.f32 (!%p1016_p8), %v1384_v47, 0.0  ;;  %v660_v13 = vmax.f32 (!%p1016_p8), %v1386_v48, 0.0 }
 0x123   : > { %v655_v20 = vmax.f32 %v1388_v51, 0.0  ;;  %v663_v22 = vmax.f32 %v1390_v52, 0.0  ;;  %s1510_s7 = smov (!%p834_p9, %s838_s7), %s837_s6 }
 0x124   : > { %v653_v12 = vmax.f32 %v1392_v55, 0.0  ;;  %v661_v14 = vmax.f32 %v1394_v56, 0.0  ;;  %p1027_p10 = scmp.lt.s32.totalorder %s1510_s7, 0  ;;  %s844_s8 = sadd.s32 2, %s1510_s7 }
 0x125   : > { %v667_v23 = vpack.c.bf16 %v655_v20, %v654_v19  ;;  %v671_v24 = vpack.c.bf16 %v663_v22, %v662_v21 }
 0x126   : > { %v666_v17 = vpack.c.bf16 %v653_v12, %v652_v11  ;;  %v670_v18 = vpack.c.bf16 %v661_v14, %v660_v13  ;;  %s1512_s8 = smov (!%p1027_p10, %s844_s8), %s1510_s7 }
 0x127   : > { %s1028_s9 = sshll.u32 %s1512_s8, 7 }
 0x128   : > { %1122 = vmatprep.mubr.bf16.mxu0 %v666_v17  ;;  %1130 = vmatprep.mubr.bf16.mxu1 %v670_v18  ;;  %s857_s10 = sshra.s32 %s1028_s9, 4 }
 0x129   : > { %1123 = vmatmul.mubr.bf16.gmra.mrb[4].mxu0 %v667_v23  ;;  %1131 = vmatmul.mubr.bf16.gmra.mrb[4].mxu1 %v671_v24  ;;  %s1029_s11 = sshll.u32 %s857_s10, 3 }
 0x12a   : > { %s860_s12 = scalar_lea.vmem [#allocation3], %s1029_s11 }
 0x1f4   : > { %v1120_v25 = vpop.f32.mrb[0].mxu0  ;;  %v1128_v26 = vpop.f32.mrb[0].mxu1 }
 0x1f5   : > { %v770_v29 = vpop.f32.mrb[1].mxu0  ;;  %v802_v30 = vpop.f32.mrb[1].mxu1 }
 0x1f6   : > { %v1121_v33 = vpop.f32.mrb[2].mxu0  ;;  %v1129_v34 = vpop.f32.mrb[2].mxu1 }
 0x1f7   : > { %v850_v37 = vpack.c.bf16 %v1121_v33, %v1120_v25  ;;  %v854_v38 = vpack.c.bf16 %v1129_v34, %v1128_v26  ;;  %v773_v41 = vpop.f32.mrb[3].mxu0  ;;  %v805_v42 = vpop.f32.mrb[3].mxu1 }
 0x1f8   : > { %v849_v45 = vpack.c.bf16 %v773_v41, %v770_v29  ;;  %v853_v46 = vpack.c.bf16 %v805_v42, %v802_v30 }
 0x1f9   : > { %862 = vst [vmem:[%s860_s12 + $0x8] sm:$0xff] %v850_v37  ;;  %866 = vst [vmem:[%s860_s12 + $0x28] sm:$0xff] %v854_v38 }
 0x1fa   : > { %861 = vst [vmem:[%s860_s12] sm:$0xff] %v849_v45  ;;  %865 = vst [vmem:[%s860_s12 + $0x20] sm:$0xff] %v853_v46 }
 0x1fc   : > { %v1124_v49 = vpop.f32.mrb[4].mxu0  ;;  %v1132_v50 = vpop.f32.mrb[4].mxu1 }
 0x1fd   : > { %v786_v53 = vpop.f32.mrb[5].mxu0  ;;  %v818_v54 = vpop.f32.mrb[5].mxu1 }
 0x1fe   : > { %v1125_v57 = vpop.f32.mrb[6].mxu0  ;;  %v1133_v58 = vpop.f32.mrb[6].mxu1 }
 0x1ff   : > { %v852_v59 = vpack.c.bf16 %v1125_v57, %v1124_v49  ;;  %v856_v60 = vpack.c.bf16 %v1133_v58, %v1132_v50  ;;  %v789_v61 = vpop.f32.mrb[7].mxu0  ;;  %v821_v62 = vpop.f32.mrb[7].mxu1 }
 0x200   : > { %v851_v63 = vpack.c.bf16 %v789_v61, %v786_v53  ;;  %v855_v0 = vpack.c.bf16 %v821_v62, %v818_v54 }
 0x201   : > { %864 = vst [vmem:[%s860_s12 + $0x18] sm:$0xff] %v852_v59  ;;  %868 = vst [vmem:[%s860_s12 + $0x38] sm:$0xff] %v856_v60 }
 0x202   : > { %863 = vst [vmem:[%s860_s12 + $0x10] sm:$0xff] %v851_v63  ;;  %867 = vst [vmem:[%s860_s12 + $0x30] sm:$0xff] %v855_v0 }
 0x203 PF: > { %p1030_p11 = scmp.ne.s32.totalorder %s1228_s15, 2 }
 0x204   : > { %873 = vst [vmem:[%s1500_s4] sm:$0xff] (!%p1030_p11), %v1368_v31  ;;  %874 = vst [vmem:[%s1500_s4 + $0x8] sm:$0xff] (!%p1030_p11), %v1376_v39 }
 0x205   : > { %872 = sbr.rel (%p1030_p11) target bundleno = 524 (0x20c), region = 56  ;;  %875 = vst [vmem:[%s1500_s4 + $0x10] sm:$0xff] (!%p1030_p11), %v1364_v27  ;;  %876 = vst [vmem:[%s1500_s4 + $0x18] sm:$0xff] (!%p1030_p11), %v1372_v35 }
 0x206   : > { %877 = vst [vmem:[%s1500_s4 + $0x20] sm:$0xff] (!%p1030_p11), %v1384_v47  ;;  %878 = vst [vmem:[%s1500_s4 + $0x28] sm:$0xff] (!%p1030_p11), %v1392_v55 }
 0x207   : > { %879 = vst [vmem:[%s1500_s4 + $0x30] sm:$0xff] (!%p1030_p11), %v1380_v43  ;;  %880 = vst [vmem:[%s1500_s4 + $0x38] sm:$0xff] (!%p1030_p11), %v1388_v51 }
 0x208   : > { %881 = vst [vmem:[%s1500_s4 + $0x40] sm:$0xff] (!%p1030_p11), %v1370_v32  ;;  %882 = vst [vmem:[%s1500_s4 + $0x48] sm:$0xff] (!%p1030_p11), %v1378_v40 }
 0x209   : > { %883 = vst [vmem:[%s1500_s4 + $0x50] sm:$0xff] (!%p1030_p11), %v1366_v28  ;;  %884 = vst [vmem:[%s1500_s4 + $0x58] sm:$0xff] (!%p1030_p11), %v1374_v36 }
 0x20a   : > { %885 = vst [vmem:[%s1500_s4 + $0x60] sm:$0xff] (!%p1030_p11), %v1386_v48  ;;  %886 = vst [vmem:[%s1500_s4 + $0x68] sm:$0xff] (!%p1030_p11), %v1394_v56 }
 0x20b   : > { %887 = vst [vmem:[%s1500_s4 + $0x70] sm:$0xff] (!%p1030_p11), %v1382_v44  ;;  %888 = vst [vmem:[%s1500_s4 + $0x78] sm:$0xff] (!%p1030_p11), %v1390_v52 }
 0x20c PF: > { %s14_s17 = sadd.s32 1, %s1236_s17   ;;  %s1501_s15 = smov %s1232_s16 }
 0x20d   : > { %p11_p12 = scmp.ge.s32.totalorder %s14_s17, 5   ;;  %s1502_s16 = smov %s1504_s18 }
 0x20f   :  { %13 = sbr.rel (!%p11_p12) target bundleno = 2 (0x2), region = 94 }

</bundles_post_ra>
